<compile_context>
chip_gen: v6e
topology: v6e:2x2x1
jax: 0.10.0
libtpu: 0.0.40
codegen_flags: <defaults>
</compile_context>

<pallas_src>
import numpy as np
import jax
import jax.numpy as jnp
from jax.experimental import pallas as pl
from jax.experimental.pallas import tpu as pltpu

TIME_EMBED_DIM = 16
HALF_EMBED = TIME_EMBED_DIM // 2      # 8
IN_DIM = 2 + TIME_EMBED_DIM           # 18
HID = 64
OUT_DIM = 2


def _mlp_kernel(x_ref, t_ref, div_ref,
                w1x_ref, w1sc_ref, b1_ref,
                w2_ref, b2_ref, w3_ref, b3_ref,
                out_ref):
    # Fused sinusoidal positional encoding: [8,1] * [1,Bt] -> [8,Bt] (sin/cos on EUP).
    ang = div_ref[...] * t_ref[...]
    # [sin; cos] stacked along sublanes -> [16, Bt]; both halves are whole 8-sublane
    # tiles so the concat is layout-free.
    sincos = jnp.concatenate([jnp.sin(ang), jnp.cos(ang)], axis=0)

    # fc1 split over the (x | sin+cos) feature groups -> no 18-row concat needed.
    h = (jnp.dot(w1x_ref[...], x_ref[...], preferred_element_type=jnp.float32)
         + jnp.dot(w1sc_ref[...], sincos, preferred_element_type=jnp.float32)
         + b1_ref[...])
    h = jnp.maximum(h, 0.0)

    # fc2 -> relu
    h = jnp.dot(w2_ref[...], h, preferred_element_type=jnp.float32) + b2_ref[...]
    h = jnp.maximum(h, 0.0)

    # fc3 (no activation). Output block [2, Bt]: batch on lanes -> lane-dense store.
    out_ref[...] = (jnp.dot(w3_ref[...], h, preferred_element_type=jnp.float32)
                    + b3_ref[...])


def diffusion_model_forward(x, t, params, *, batch_tile=2048):
    """Full forward pass of DiffusionModel.

    x: [B, 2] float, t: [B] int/float timesteps.
    params: PyTorch-layout weights: w1 [64,18], b1 [64], w2 [64,64], b2 [64],
            w3 [2,64], b3 [2].
    Returns [B, 2] float32.
    """
    B = int(x.shape[0])

    # Lane-aligned batch tile (multiple of 128), capped at `batch_tile`.
    batch_tile = max(128, (int(batch_tile) // 128) * 128)
    bt = int(min(batch_tile, pl.cdiv(B, 128) * 128))
    B_pad = int(pl.cdiv(B, bt) * bt)
    grid = (B_pad // bt,)

    # Transposed (feature-major) inputs: batch lives on the 128-lane axis.
    x_T = jnp.zeros((2, B_pad), jnp.float32).at[:, :B].set(
        x.astype(jnp.float32).T)
    t_T = jnp.zeros((1, B_pad), jnp.float32).at[:, :B].set(
        t.astype(jnp.float32).reshape(1, -1))

    div_term = jnp.exp(
        jnp.arange(0, TIME_EMBED_DIM, 2, dtype=jnp.float32)
        * (-np.log(10000.0) / TIME_EMBED_DIM)).reshape(HALF_EMBED, 1)

    w1, b1 = params["w1"], params["b1"]
    w2, b2 = params["w2"], params["b2"]
    w3, b3 = params["w3"], params["b3"]

    # Split fc1 weight into x / (sin|cos) column groups; biases as [n, 1] columns.
    w1x = w1[:, :2]                               # [64, 2]
    w1sc = w1[:, 2:]                              # [64, 16]  (sin cols then cos cols)
    b1c = b1.reshape(HID, 1)
    b2c = b2.reshape(HID, 1)
    b3c = b3.reshape(OUT_DIM, 1)

    full = lambda a: pl.BlockSpec(a.shape, lambda i: (0, 0))
    tile = lambda rows: pl.BlockSpec((rows, bt), lambda i: (0, i))

    param_count = (w1.size + b1.size + w2.size + b2.size
                   + w3.size + b3.size + HALF_EMBED)
    cost = pl.CostEstimate(
        flops=2 * B_pad * (IN_DIM * HID + HID * HID + HID * OUT_DIM),
        transcendentals=B_pad * TIME_EMBED_DIM,
        bytes_accessed=4 * (B_pad * (2 + 1 + OUT_DIM) + param_count),
    )

    out_T = pl.pallas_call(
        _mlp_kernel,
        out_shape=jax.ShapeDtypeStruct((OUT_DIM, B_pad), jnp.float32),
        grid=grid,
        in_specs=[
            tile(2),             # x^T tile   [2,  Bt]
            tile(1),             # t^T tile   [1,  Bt]
            full(div_term),      # div_term   [8,  1]
            full(w1x), full(w1sc), full(b1c),
            full(w2), full(b2c),
            full(w3), full(b3c),
        ],
        out_specs=tile(OUT_DIM),  # [2, Bt] -> batch on lanes (lane-dense)
        compiler_params=pltpu.CompilerParams(
            dimension_semantics=("parallel",)),
        cost_estimate=cost,
    )(x_T, t_T, div_term, w1x, w1sc, b1c, w2, b2c, w3, b3c)

    return out_T[:, :B].T


def init_params(seed=42):
    """Deterministic synthetic parameters in PyTorch layout (W: [out, in], b: [out])."""
    key = jax.random.PRNGKey(seed)
    ks = jax.random.split(key, 6)

    def lin(kw, kb, fan_in, fan_out):
        bound = 1.0 / np.sqrt(fan_in)
        w = jax.random.uniform(kw, (fan_out, fan_in), jnp.float32, -bound, bound)
        b = jax.random.uniform(kb, (fan_out,), jnp.float32, -bound, bound)
        return w, b

    w1, b1 = lin(ks[0], ks[1], IN_DIM, HID)
    w2, b2 = lin(ks[2], ks[3], HID, HID)
    w3, b3 = lin(ks[4], ks[5], HID, OUT_DIM)
    return {"w1": w1, "b1": b1, "w2": w2, "b2": b2, "w3": w3, "b3": b3}


# ---------------- pure-JAX reference (mirrors the PyTorch module) ----------------

def pos_encoding(timesteps, output_dim):
    position = timesteps.reshape(-1, 1).astype(jnp.float32)
    div_term = jnp.exp(
        jnp.arange(0, output_dim, 2, dtype=jnp.float32)
        * (-np.log(10000.0) / output_dim))
    return jnp.concatenate(
        [jnp.sin(position * div_term), jnp.cos(position * div_term)], axis=1)


def _reference_forward(x, t, params):
    t_embed = pos_encoding(t, TIME_EMBED_DIM)
    h = jnp.concatenate([x.astype(jnp.float32), t_embed], axis=-1)
    h = jnp.maximum(h @ params["w1"].T + params["b1"], 0.0)
    h = jnp.maximum(h @ params["w2"].T + params["b2"], 0.0)
    return h @ params["w3"].T + params["b3"]


if __name__ == "__main__":
    B = 16  # small batch; wrapper pads to a lane-aligned tile internally
    key = jax.random.PRNGKey(0)
    kx, kt = jax.random.split(key)
    x = jax.random.normal(kx, (B, 2), dtype=jnp.float32)
    t = jax.random.randint(kt, (B,), 1, 1000, dtype=jnp.int32)

    params = init_params()

    fwd = jax.jit(diffusion_model_forward)
    out = fwd(x, t, params)
    out = jax.block_until_ready(out)

    ref = _reference_forward(x, t, params)
    # Slightly looser tolerance: sin/cos of large timestep arguments are computed
    # in-kernel (Mosaic) vs. XLA in the reference and may differ by a few ULPs.
    np.testing.assert_allclose(np.asarray(out), np.asarray(ref),
                               rtol=1e-3, atol=1e-3)

    print("KERNEL_OK")
</pallas_src>

<mosaic_0001>
module attributes {stable_mosaic.version = 11 : i64} {
  func.func @_mlp_kernel(%arg0: i32, %arg1: memref<2x128xf32, #tpu.memory_space<vmem>>, %arg2: memref<1x128xf32, #tpu.memory_space<vmem>>, %arg3: memref<8x1xf32, #tpu.memory_space<vmem>>, %arg4: memref<64x2xf32, #tpu.memory_space<vmem>>, %arg5: memref<64x16xf32, #tpu.memory_space<vmem>>, %arg6: memref<64x1xf32, #tpu.memory_space<vmem>>, %arg7: memref<64x64xf32, #tpu.memory_space<vmem>>, %arg8: memref<64x1xf32, #tpu.memory_space<vmem>>, %arg9: memref<2x64xf32, #tpu.memory_space<vmem>>, %arg10: memref<2x1xf32, #tpu.memory_space<vmem>>, %arg11: memref<2x128xf32, #tpu.memory_space<vmem>>) attributes {dimension_semantics = [#tpu.dimension_semantics<parallel>], iteration_bounds = array<i64: 1>, scalar_prefetch = 0 : i64, scratch_operands = 0 : i64, tpu.core_type = #tpu.core_type<tc>, window_params = [{transform_indices = @transform_0, window_bounds = array<i64: 2, 128>}, {transform_indices = @transform_1, window_bounds = array<i64: 1, 128>}, {pipeline_mode = #tpu.pipeline_mode<synchronous>, transform_indices = @transform_2, window_bounds = array<i64: 8, 1>}, {pipeline_mode = #tpu.pipeline_mode<synchronous>, transform_indices = @transform_3, window_bounds = array<i64: 64, 2>}, {pipeline_mode = #tpu.pipeline_mode<synchronous>, transform_indices = @transform_4, window_bounds = array<i64: 64, 16>}, {pipeline_mode = #tpu.pipeline_mode<synchronous>, transform_indices = @transform_5, window_bounds = array<i64: 64, 1>}, {pipeline_mode = #tpu.pipeline_mode<synchronous>, transform_indices = @transform_6, window_bounds = array<i64: 64, 64>}, {pipeline_mode = #tpu.pipeline_mode<synchronous>, transform_indices = @transform_7, window_bounds = array<i64: 64, 1>}, {pipeline_mode = #tpu.pipeline_mode<synchronous>, transform_indices = @transform_8, window_bounds = array<i64: 2, 64>}, {pipeline_mode = #tpu.pipeline_mode<synchronous>, transform_indices = @transform_9, window_bounds = array<i64: 2, 1>}, {transform_indices = @transform_10, window_bounds = array<i64: 2, 128>}]} {
    %c0 = arith.constant 0 : index
    %c0_0 = arith.constant 0 : index
    %0 = vector.load %arg3[%c0, %c0_0] : memref<8x1xf32, #tpu.memory_space<vmem>>, vector<8x1xf32>
    %c0_1 = arith.constant 0 : index
    %c0_2 = arith.constant 0 : index
    %1 = vector.load %arg2[%c0_1, %c0_2] : memref<1x128xf32, #tpu.memory_space<vmem>>, vector<1x128xf32>
    %2 = vector.broadcast %0 : vector<8x1xf32> to vector<8x128xf32>
    %3 = vector.broadcast %1 : vector<1x128xf32> to vector<8x128xf32>
    %4 = arith.mulf %2, %3 : vector<8x128xf32>
    %5 = math.sin %4 : vector<8x128xf32>
    %6 = math.cos %4 : vector<8x128xf32>
    %7 = tpu.concatenate %5, %6 in 0 : vector<8x128xf32>, vector<8x128xf32> -> vector<16x128xf32>
    %c0_3 = arith.constant 0 : index
    %c0_4 = arith.constant 0 : index
    %8 = vector.load %arg4[%c0_3, %c0_4] : memref<64x2xf32, #tpu.memory_space<vmem>>, vector<64x2xf32>
    %c0_5 = arith.constant 0 : index
    %c0_6 = arith.constant 0 : index
    %9 = vector.load %arg1[%c0_5, %c0_6] : memref<2x128xf32, #tpu.memory_space<vmem>>, vector<2x128xf32>
    %cst = arith.constant dense<0.000000e+00> : vector<64x128xf32>
    %10 = tpu.matmul %8, %9, %cst {dimension_numbers = #tpu.dot_dimension_numbers<[1], [0], [0], [1], [0, 0, 1, 1], [], []>} : vector<64x2xf32>, vector<2x128xf32>, vector<64x128xf32> -> vector<64x128xf32>
    %c0_7 = arith.constant 0 : index
    %c0_8 = arith.constant 0 : index
    %11 = vector.load %arg5[%c0_7, %c0_8] : memref<64x16xf32, #tpu.memory_space<vmem>>, vector<64x16xf32>
    %cst_9 = arith.constant dense<0.000000e+00> : vector<64x128xf32>
    %12 = tpu.matmul %11, %7, %cst_9 {dimension_numbers = #tpu.dot_dimension_numbers<[1], [0], [0], [1], [0, 0, 1, 1], [], []>} : vector<64x16xf32>, vector<16x128xf32>, vector<64x128xf32> -> vector<64x128xf32>
    %13 = arith.addf %10, %12 : vector<64x128xf32>
    %c0_10 = arith.constant 0 : index
    %c0_11 = arith.constant 0 : index
    %14 = vector.load %arg6[%c0_10, %c0_11] : memref<64x1xf32, #tpu.memory_space<vmem>>, vector<64x1xf32>
    %15 = vector.broadcast %14 : vector<64x1xf32> to vector<64x128xf32>
    %16 = arith.addf %13, %15 : vector<64x128xf32>
    %cst_12 = arith.constant 0.000000e+00 : f32
    %17 = vector.broadcast %cst_12 : f32 to vector<64x128xf32>
    %18 = arith.maximumf %16, %17 : vector<64x128xf32>
    %c0_13 = arith.constant 0 : index
    %c0_14 = arith.constant 0 : index
    %19 = vector.load %arg7[%c0_13, %c0_14] : memref<64x64xf32, #tpu.memory_space<vmem>>, vector<64x64xf32>
    %cst_15 = arith.constant dense<0.000000e+00> : vector<64x128xf32>
    %20 = tpu.matmul %19, %18, %cst_15 {dimension_numbers = #tpu.dot_dimension_numbers<[1], [0], [0], [1], [0, 0, 1, 1], [], []>} : vector<64x64xf32>, vector<64x128xf32>, vector<64x128xf32> -> vector<64x128xf32>
    %c0_16 = arith.constant 0 : index
    %c0_17 = arith.constant 0 : index
    %21 = vector.load %arg8[%c0_16, %c0_17] : memref<64x1xf32, #tpu.memory_space<vmem>>, vector<64x1xf32>
    %22 = vector.broadcast %21 : vector<64x1xf32> to vector<64x128xf32>
    %23 = arith.addf %20, %22 : vector<64x128xf32>
    %cst_18 = arith.constant 0.000000e+00 : f32
    %24 = vector.broadcast %cst_18 : f32 to vector<64x128xf32>
    %25 = arith.maximumf %23, %24 : vector<64x128xf32>
    %c0_19 = arith.constant 0 : index
    %c0_20 = arith.constant 0 : index
    %26 = vector.load %arg9[%c0_19, %c0_20] : memref<2x64xf32, #tpu.memory_space<vmem>>, vector<2x64xf32>
    %cst_21 = arith.constant dense<0.000000e+00> : vector<2x128xf32>
    %27 = tpu.matmul %26, %25, %cst_21 {dimension_numbers = #tpu.dot_dimension_numbers<[1], [0], [0], [1], [0, 0, 1, 1], [], []>} : vector<2x64xf32>, vector<64x128xf32>, vector<2x128xf32> -> vector<2x128xf32>
    %c0_22 = arith.constant 0 : index
    %c0_23 = arith.constant 0 : index
    %28 = vector.load %arg10[%c0_22, %c0_23] : memref<2x1xf32, #tpu.memory_space<vmem>>, vector<2x1xf32>
    %29 = vector.broadcast %28 : vector<2x1xf32> to vector<2x128xf32>
    %30 = arith.addf %27, %29 : vector<2x128xf32>
    %c0_24 = arith.constant 0 : index
    %c0_25 = arith.constant 0 : index
    %31 = vector.load %arg11[%c0_24, %c0_25] : memref<2x128xf32, #tpu.memory_space<vmem>>, vector<2x128xf32>
    tpu.vector_store %arg11[%c0_24, %c0_25], %30 {strides = array<i32>} : memref<2x128xf32, #tpu.memory_space<vmem>>, vector<2x128xf32>,
    return
  }
  func.func @transform_0(%arg0: i32) -> (i32, i32) {
    %c0_i32 = arith.constant 0 : i32
    %c0_i32_0 = arith.constant 0 : i32
    return %c0_i32, %arg0 : i32, i32
  }
  func.func @transform_1(%arg0: i32) -> (i32, i32) {
    %c0_i32 = arith.constant 0 : i32
    %c0_i32_0 = arith.constant 0 : i32
    return %c0_i32, %arg0 : i32, i32
  }
  func.func @transform_2(%arg0: i32) -> (i32, i32) {
    %c0_i32 = arith.constant 0 : i32
    %c0_i32_0 = arith.constant 0 : i32
    %c0_i32_1 = arith.constant 0 : i32
    return %c0_i32, %c0_i32_0 : i32, i32
  }
  func.func @transform_3(%arg0: i32) -> (i32, i32) {
    %c0_i32 = arith.constant 0 : i32
    %c0_i32_0 = arith.constant 0 : i32
    %c0_i32_1 = arith.constant 0 : i32
    return %c0_i32, %c0_i32_0 : i32, i32
  }
  func.func @transform_4(%arg0: i32) -> (i32, i32) {
    %c0_i32 = arith.constant 0 : i32
    %c0_i32_0 = arith.constant 0 : i32
    %c0_i32_1 = arith.constant 0 : i32
    return %c0_i32, %c0_i32_0 : i32, i32
  }
  func.func @transform_5(%arg0: i32) -> (i32, i32) {
    %c0_i32 = arith.constant 0 : i32
    %c0_i32_0 = arith.constant 0 : i32
    %c0_i32_1 = arith.constant 0 : i32
    return %c0_i32, %c0_i32_0 : i32, i32
  }
  func.func @transform_6(%arg0: i32) -> (i32, i32) {
    %c0_i32 = arith.constant 0 : i32
    %c0_i32_0 = arith.constant 0 : i32
    %c0_i32_1 = arith.constant 0 : i32
    return %c0_i32, %c0_i32_0 : i32, i32
  }
  func.func @transform_7(%arg0: i32) -> (i32, i32) {
    %c0_i32 = arith.constant 0 : i32
    %c0_i32_0 = arith.constant 0 : i32
    %c0_i32_1 = arith.constant 0 : i32
    return %c0_i32, %c0_i32_0 : i32, i32
  }
  func.func @transform_8(%arg0: i32) -> (i32, i32) {
    %c0_i32 = arith.constant 0 : i32
    %c0_i32_0 = arith.constant 0 : i32
    %c0_i32_1 = arith.constant 0 : i32
    return %c0_i32, %c0_i32_0 : i32, i32
  }
  func.func @transform_9(%arg0: i32) -> (i32, i32) {
    %c0_i32 = arith.constant 0 : i32
    %c0_i32_0 = arith.constant 0 : i32
    %c0_i32_1 = arith.constant 0 : i32
    return %c0_i32, %c0_i32_0 : i32, i32
  }
  func.func @transform_10(%arg0: i32) -> (i32, i32) {
    %c0_i32 = arith.constant 0 : i32
    %c0_i32_0 = arith.constant 0 : i32
    return %c0_i32, %arg0 : i32, i32
  }
}

</mosaic_0001>

<bundles_post_ra>
// kernel: diffusion_model_forward.1
= control target key start
LH: loop header
LB: loop body
LE: loop exit
PB: predicated region body
PF: predicated region fallthrough
CT: control target
= control target key end

     0   :  { %v1055_v0 = vmov 0   ;;  %vm428_vm0 = vcmask 1041408   ;;  %vm403_vm1 = vcmask 15360   ;;  %vm273_vm2 = vcmask 130048   ;;  %s1303_s2 = inlined_call_operand.vmem [shape: f32[8,1], index: 2, kind: input, shape index: {}]   ;;  %s1304_s5 = inlined_call_operand.vmem [shape: f32[64,1], index: 5, kind: input, shape index: {}]   ;;  %s1305_s7 = inlined_call_operand.vmem [shape: f32[64,1], index: 7, kind: input, shape index: {}]   ;;  %s1306_s0 = inlined_call_operand.vmem [shape: f32[2,128], index: 0, kind: input, shape index: {}]   ;;  %s1307_s3 = inlined_call_operand.vmem [shape: f32[64,2], index: 3, kind: input, shape index: {}]   ;;  %s1308_s4 = inlined_call_operand.vmem [shape: f32[64,16], index: 4, kind: input, shape index: {}]   ;;  %s1309_s1 = inlined_call_operand.vmem [shape: f32[1,128], index: 1, kind: input, shape index: {}]   ;;  %s1310_s9 = inlined_call_operand.vmem [shape: f32[2,1], index: 9, kind: input, shape index: {}]   ;;  %s1311_s6 = inlined_call_operand.vmem [shape: f32[64,64], index: 6, kind: input, shape index: {}]   ;;  %s1312_s8 = inlined_call_operand.vmem [shape: f32[2,64], index: 8, kind: input, shape index: {}]   ;;  %s1313_s10 = inlined_call_operand.vmem [shape: f32[2,128], index: 10, kind: output, shape index: {}]  }
   0x1   :  { %1049 = vset.pattern.permute.xlu0 %v1055_v0  ;;  %v35_v1 = vld [vmem:[%s1303_s2] sm:$0xff]  ;;  %1050 = vset.pattern.permute.xlu1 %v1055_v0  ;;  %v544_v2 = vld [vmem:[%s1304_s5 + $0x38] sm:$0xff]  ;;  %v539_v4 = vld [vmem:[%s1304_s5 + $0x10] sm:$0xff]  ;;  %v1056_v43 = vmov 2102212464  }
   0x2   :  { %39 = vperm.xlu0 %1049, %v35_v1   ;;  %v541_v3 = vld [vmem:[%s1304_s5 + $0x20] sm:$0xff]  ;;  %v615_v6 = vld [vmem:[%s1305_s7 + $0x30] sm:$0xff]  ;;  %v257_v12 = vld [vmem:[%s1307_s3 + $0x8] sm:$0xff]  ;;  %v1057_v45 = vmov 920167782  }
   0x3   :  { %v537_v5 = vld [vmem:[%s1304_s5] sm:$0xff]  ;;  %v611_v8 = vld [vmem:[%s1305_s7 + $0x10] sm:$0xff]  ;;  %v259_v15 = vld [vmem:[%s1307_s3 + $0x18] sm:$0xff]  ;;  %v1058_v49 = vmov 1326507024  }
   0x4   :  { %v613_v7 = vld [vmem:[%s1305_s7 + $0x20] sm:$0xff]  ;;  %v258_v14 = vld [vmem:[%s1307_s3 + $0x10] sm:$0xff]  ;;  %v261_v17 = vld [vmem:[%s1307_s3 + $0x28] sm:$0xff]  ;;  %v1059_v51 = vmov 683565275  }
   0x5   :  { %v609_v9 = vld [vmem:[%s1305_s7] sm:$0xff]  ;;  %v262_v18 = vld [vmem:[%s1307_s3 + $0x30] sm:$0xff]  ;;  %v263_v19 = vld [vmem:[%s1307_s3 + $0x38] sm:$0xff]  ;;  %v1060_v53 = vmov 2475754826  }
   0x6   :  { %582 = vperm.xlu0 %1049, %v544_v2   ;;  %v264_v10 = vld [vmem:[%s1306_s0] sm:$0x3]  ;;  %v543_v20 = vld [vmem:[%s1304_s5 + $0x30] sm:$0xff]  ;;  %v542_v21 = vld [vmem:[%s1304_s5 + $0x28] sm:$0xff]  ;;  %v1061_v56 = vmov 2131351028  }
   0x7   :  { %975 = vmatprep.subr.msk.mxu1 %vm428_vm0, %v264_v10  ;;  %v256_v11 = vld [vmem:[%s1307_s3] sm:$0xff]  ;;  %577 = vperm.xlu1 %1050, %v543_v20   ;;  %v540_v22 = vld [vmem:[%s1304_s5 + $0x18] sm:$0xff]  ;;  %v538_v23 = vld [vmem:[%s1304_s5 + $0x8] sm:$0xff] }
   0x8   :  { %976 = vmatpush3.msk.msra.mxu1 %vm428_vm0, %v264_v10  ;;  %977 = vmatprep.mubr.msk.f32.mxu1 %vm403_vm1, %v256_v11  ;;  %v265_v13 = vld [vmem:[%s1308_s4] sm:$0xff]  ;;  %v616_v24 = vld [vmem:[%s1305_s7 + $0x38] sm:$0xff]  ;;  %v614_v25 = vld [vmem:[%s1305_s7 + $0x28] sm:$0xff] }
   0x9   :  { %978 = vmatmul.mubr.msk.f32.vlgmr.msra.gmra.mxu1 %vm403_vm1, %v257_v12  ;;  %963 = vmatprep.mubr.msk.f32.mxu0 %vm273_vm2, %v265_v13  ;;  %v260_v16 = vld [vmem:[%s1307_s3 + $0x20] sm:$0xff]  ;;  %v612_v26 = vld [vmem:[%s1305_s7 + $0x18] sm:$0xff]  ;;  %v610_v30 = vld [vmem:[%s1305_s7 + $0x8] sm:$0xff] }
   0xa   :  { %567 = vperm.xlu0 %1049, %v541_v3   ;;  %980 = vmatprep.mubr.msk.f32.mxu1 %vm403_vm1, %v258_v14  ;;  %v880_v27 = vld [vmem:[%s1309_s1] ss:$0 sm:$0xff] }
   0xb   :  { %572 = vperm.xlu1 %1050, %v542_v21   ;;  %v796_v34 = vld [vmem:[%s1310_s9] sm:$0x3] }
   0xd   :  { %981 = vmatmul.mubr.msk.f32.gmra.mxu1 %vm403_vm1, %v259_v15 }
   0xe   :  { %557 = vperm.xlu0 %1049, %v539_v4   ;;  %983 = vmatprep.mubr.msk.f32.mxu1 %vm403_vm1, %v260_v16 }
   0xf   :  { %562 = vperm.xlu1 %1050, %v540_v22  }
  0x11   :  { %984 = vmatmul.mubr.msk.f32.gmra.mxu1 %vm403_vm1, %v261_v17 }
  0x12   :  { %547 = vperm.xlu0 %1049, %v537_v5   ;;  %986 = vmatprep.mubr.msk.f32.mxu1 %vm403_vm1, %v262_v18 }
  0x13   :  { %552 = vperm.xlu1 %1050, %v538_v23  }
  0x15   :  { %987 = vmatmul.mubr.msk.f32.gmra.mxu1 %vm403_vm1, %v263_v19 }
  0x16   :  { %649 = vperm.xlu0 %1049, %v615_v6  }
  0x17   :  { %654 = vperm.xlu1 %1050, %v616_v24  }
  0x1a   :  { %639 = vperm.xlu0 %1049, %v613_v7  }
  0x1b   :  { %644 = vperm.xlu1 %1050, %v614_v25  }
  0x1e   :  { %629 = vperm.xlu0 %1049, %v611_v8  }
  0x1f   :  { %634 = vperm.xlu1 %1050, %v612_v26  }
  0x22   :  { %619 = vperm.xlu0 %1049, %v609_v9  }
  0x23   :  { %624 = vperm.xlu1 %1050, %v610_v30  }
  0x27   :  { %799 = vperm.xlu1 %1050, %v796_v34  }
  0x7d   :  { %v40_v28 = vpop.permute.xlu0 %39 }
  0x7e   :  { %v1209_v29 = vmul.f32 %v880_v27, %v40_v28 }
  0x80   :  { %v52_v31 = vand.u32 2139095040, %v1209_v29  ;;  %v49_v32 = vand.u32 2147483647, %v1209_v29  ;;  %vm51_vm10 = vcmp.lt.s32.totalorder %v1209_v29, 0 }
  0x82   :  { %v53_v33 = vshrl.u32 %v52_v31, 23  ;;  %v56_v36 = vand.u32 8388607, %v49_v32  ;;  %vm50_vm11 = vcmp.le.f32.partialorder %v49_v32, 0.7853982 }
  0x84   :  { %v881_v35 = vadd.s32 4294967169, %v53_v33  ;;  %v57_v39 = vor.u32 8388608, %v56_v36 }
  0x86   :  { %v59_v37 = vadd.s32 1, %v881_v35  ;;  %v97_v47 = vshll.u32 %v57_v39, 8 }
  0x88   :  { %vm60_vm3 = vcmp.gt.s32.totalorder %v59_v37, 0 }
  0x89   :  { %v61_v38 = vsel %vm60_vm3, %v59_v37, 0  ;;  %vm141_vm3 = vweird.f32 %v1209_v29 }
  0x8a   :  { %v63_v40 = vand.u32 31, %v61_v38  ;;  %v62_v41 = vshrl.u32 %v61_v38, 5 }
  0x8c   :  { %v64_v42 = vsub.s32 32, %v63_v40  ;;  %v75_v44 = vshll.u32 %v1056_v43, %v63_v40  ;;  %v78_v46 = vshll.u32 %v1057_v45, %v63_v40  ;;  %v66_v52 = vshll.u32 %v1059_v51, %v63_v40 }
  0x8d   :  { %v69_v55 = vshll.u32 %v1060_v53, %v63_v40  ;;  %v72_v58 = vshll.u32 %v1061_v56, %v63_v40  ;;  %vm84_vm4 = vcmp.lt.s32.totalorder %v62_v41, 4  ;;  %vm81_vm5 = vcmp.lt.s32.totalorder %v62_v41, 1 }
  0x8e   :  { %v76_v48 = vshrl.u32 %v1057_v45, %v64_v42  ;;  %v79_v50 = vshrl.u32 %v1058_v49, %v64_v42  ;;  %v67_v54 = vshrl.u32 %v1060_v53, %v64_v42  ;;  %v70_v57 = vshrl.u32 %v1061_v56, %v64_v42 }
  0x8f   :  { %v73_v59 = vshrl.u32 %v1056_v43, %v64_v42  ;;  %v65_v63 = vshrl.u32 %v1059_v51, %v64_v42  ;;  %vm82_vm6 = vcmp.lt.s32.totalorder %v62_v41, 2  ;;  %vm83_vm7 = vcmp.lt.s32.totalorder %v62_v41, 3 }
  0x90   :  { %v77_v60 = vor.u32 %v76_v48, %v75_v44  ;;  %v80_v61 = vor.u32 %v79_v50, %v78_v46  ;;  %v68_v62 = vor.u32 %v67_v54, %v66_v52  ;;  %v71_v0 = vor.u32 %v70_v57, %v69_v55 }
  0x91   :  { %v74_v1 = vor.u32 %v73_v59, %v72_v58 }
  0x92   :  { %v90_v2 = vsel %vm84_vm4, %v77_v60, 920167782  ;;  %v94_v3 = vsel %vm84_vm4, %v80_v61, 1326507024  ;;  %v89_v5 = vsel %vm81_vm5, %v68_v62, %v71_v0  ;;  %v85_v8 = vsel %vm81_vm5, %v65_v63, %v68_v62 }
  0x93   :  { %v86_v4 = vsel %vm84_vm4, %v74_v1, 2102212464  ;;  %v91_v6 = vsel %vm83_vm7, %v74_v1, %v90_v2  ;;  %v93_v7 = vsel %vm81_vm5, %v71_v0, %v74_v1  ;;  %v95_v11 = vsel %vm83_vm7, %v77_v60, %v94_v3  ;;  %v266_v1 = vld [vmem:[%s1308_s4 + $0x8] sm:$0xff]  ;;  %v267_v2 = vld [vmem:[%s1308_s4 + $0x10] sm:$0xff]  ;;  %v269_v3 = vld [vmem:[%s1308_s4 + $0x20] sm:$0xff] }
  0x94   :  { %v87_v9 = vsel %vm83_vm7, %v71_v0, %v86_v4  ;;  %v92_v10 = vsel %vm82_vm6, %v89_v5, %v91_v6  ;;  %v96_v12 = vsel %vm82_vm6, %v93_v7, %v95_v11  ;;  %v270_v4 = vld [vmem:[%s1308_s4 + $0x28] sm:$0xff]  ;;  %v271_v5 = vld [vmem:[%s1308_s4 + $0x30] sm:$0xff]  ;;  %v272_v6 = vld [vmem:[%s1308_s4 + $0x38] sm:$0xff]  ;;  %vm657_vm4 = vcmask 523264  }
  0x95   :  { %v1221_v13 = vmul.u32.u64.low %v97_v47, %v92_v10  ;;  %v1222_v14 = vmul.u32.u64.high %v97_v47, %v92_v10, %v1221_v13  ;;  %v1224_v15 = vmul.u32.u64.low %v97_v47, %v96_v12  ;;  %v1225_v16 = vmul.u32.u64.high %v97_v47, %v96_v12, %v1224_v15  ;;  %v601_v7 = vld [vmem:[%s1311_s6] sm:$0xff] }
  0x96   :  { %v88_v17 = vsel %vm82_vm6, %v85_v8, %v87_v9  ;;  %1005 = vmatprep.mubr.msk.f32.mxu1 %vm657_vm4, %v601_v7 }
  0x97   :  { %v107_v18 = vadd.s32 1, %v1222_v14  ;;  %v104_v19 = vmul.u32 %v97_v47, %v88_v17  ;;  %vm106_vm8 = vc.u32 %v1225_v16, %v1221_v13  ;;  %v105_v33 = vadd.s32 %v1221_v13, %v1225_v16  ;;  %v578_v16 = vpop.permute.xlu1 %577 }
  0x99   :  { %v108_v20 = vsel %vm106_vm8, %v107_v18, %v1222_v14 }
  0x9a   :  { %v109_v21 = vadd.s32 %v108_v20, %v104_v19  ;;  %v583_v19 = vpop.permute.xlu0 %582 }
  0x9c   :  { %v110_v22 = vadd.s32 536870912, %v109_v21 }
  0x9e   :  { %v111_v23 = vshrl.u32 %v110_v22, 30 }
  0xa0   :  { %v112_v24 = vshll.u32 %v111_v23, 30  ;;  %v135_v46 = vsub.s32 4, %v111_v23 }
  0xa2   :  { %v113_v25 = vsub.s32 %v109_v21, %v112_v24  ;;  %v136_v49 = vsel %vm51_vm10, %v135_v46, %v111_v23  ;;  %v573_v23 = vpop.permute.xlu1 %572 }
  0xa3   :  { %v138_v50 = vsel %vm50_vm11, 0, %v136_v49 }
  0xa4   :  { %v115_v26 = vsub.s32 0, %v113_v25  ;;  %v142_v51 = vadd.s32 3, %v138_v50  ;;  %v246_v52 = vand.u32 3, %v138_v50 }
  0xa6   :  { %v882_v27 = vmin.u32 %v115_v26, %v113_v25  ;;  %v143_v53 = vand.u32 3, %v142_v51  ;;  %vm251_vm12 = vcmp.eq.s32.totalorder %v246_v52, 2  ;;  %vm248_vm14 = vcmp.eq.s32.totalorder %v246_v52, 0 }
  0xa7   :  { %vm247_vm0 = vcmp.lt.s32.totalorder %v246_v52, 2 }
  0xa8   :  { %v117_v28 = vclz %v882_v27  ;;  %vm148_vm13 = vcmp.eq.s32.totalorder %v143_v53, 2  ;;  %vm145_vm15 = vcmp.eq.s32.totalorder %v143_v53, 0  ;;  %vm144_vm1 = vcmp.lt.s32.totalorder %v143_v53, 2 }
  0xaa   :  { %v883_v30 = vadd.s32 4294967294, %v117_v28 }
  0xac   :  { %vm884_vm9 = vcmp.lt.s32.totalorder %v883_v30, 0 }
  0xad   :  { %v120_v31 = vsel %vm884_vm9, 0, %v883_v30 }
  0xae   :  { %v121_v34 = vsub.s32 32, %v120_v31  ;;  %v125_v35 = vsub.s32 4294967266, %v120_v31  ;;  %v122_v36 = vshll.u32 %v113_v25, %v120_v31  ;;  %v568_v25 = vpop.permute.xlu0 %567 }
  0xb0   :  { %v123_v37 = vshrl.u32 %v105_v33, %v121_v34  ;;  %v126_v38 = vadd.s32 127, %v125_v35 }
  0xb2   :  { %v124_v39 = vor.u32 %v123_v37, %v122_v36  ;;  %v127_v40 = vshll.u32 %v126_v38, 23 }
  0xb4   :  { %v128_v41 = vor.u32 4788187, %v127_v40  ;;  %v131_v43 = vcvt.s32.f32 %v124_v39  ;;  %v563_v39 = vpop.permute.xlu1 %562 }
  0xb6   :  { %v129_v42 = vand.u32 2147483647, %v128_v41 }
  0xb8   :  { %v132_v44 = vmul.f32 %v131_v43, %v129_v42  ;;  %v558_v43 = vpop.permute.xlu0 %557  ;;  %v553_v50 = vpop.permute.xlu1 %552 }
  0xba   :  { %v133_v45 = vxor.u32 2147483648, %v132_v44 }
  0xbc   :  { %v134_v47 = vsel %vm51_vm10, %v133_v45, %v132_v44  ;;  %v548_v53 = vpop.permute.xlu0 %547 }
  0xbd   :  { %v137_v48 = vsel %vm50_vm11, %v1209_v29, %v134_v47  ;;  %v268_v29 = vld [vmem:[%s1308_s4 + $0x18] sm:$0xff] }
  0xbe   :  { %1051 = vcosq.f32 %v137_v48 }
  0xbf   :  { %1053 = vsinq.f32 %v137_v48 }
  0xc9   :  { %v979_v8 = vpop.f32.mrf.mxu1 }
  0xcb   :  { %v1052_v54 = vpop.eup %1051  ;;  %v498_v9 = vpop.f32.mrf.mxu1 }
  0xcc   :  { %v1054_v55 = vpop.eup %1053  ;;  %v149_v56 = vxor.u32 2147483648, %v1052_v54 }
  0xcd   :  { %v146_v57 = vxor.u32 2147483648, %v1054_v55  ;;  %v982_v10 = vpop.f32.mrf.mxu1 }
  0xce   :  { %v253_v58 = vsel %vm251_vm12, %v149_v56, %v1054_v55  ;;  %v150_v32 = vsel %vm148_vm13, %v149_v56, %v1054_v55 }
  0xcf   :  { %v250_v59 = vsel %vm248_vm14, %v1052_v54, %v146_v57  ;;  %v147_v60 = vsel %vm145_vm15, %v1052_v54, %v146_v57  ;;  %v508_v11 = vpop.f32.mrf.mxu1 }
  0xd0   :  { %v254_v61 = vsel %vm247_vm0, %v250_v59, %v253_v58  ;;  %v151_v62 = vsel %vm144_vm1, %v147_v60, %v150_v32  ;;  %v602_v58 = vld [vmem:[%s1311_s6 + $0x8] sm:$0xff]  ;;  %v603_v32 = vld [vmem:[%s1311_s6 + $0x10] sm:$0xff]  ;;  %v604_v59 = vld [vmem:[%s1311_s6 + $0x18] sm:$0xff] }
  0xd1   :  { %v255_v63 = vsel %vm141_vm3, nan, %v254_v61  ;;  %v152_v0 = vsel %vm141_vm3, nan, %v151_v62  ;;  %v985_v14 = vpop.f32.mrf.mxu1  ;;  %v605_v60 = vld [vmem:[%s1311_s6 + $0x20] sm:$0xff]  ;;  %v606_v61 = vld [vmem:[%s1311_s6 + $0x28] sm:$0xff]  ;;  %v607_v62 = vld [vmem:[%s1311_s6 + $0x30] sm:$0xff] }
  0xd2   :  { %959 = vmatprep.subr.mxu0 %v255_v63 }
  0xd3   :  { %960 = vmatpush3.msra.mxu0 %v255_v63  ;;  %v518_v18 = vpop.f32.mrf.mxu1  ;;  %v608_v63 = vld [vmem:[%s1311_s6 + $0x38] sm:$0xff] }
  0xd4   :  { %961 = vmatprep.subr.mxu0 %v152_v0 }
  0xd5   :  { %962 = vmatpush3.msra.mxu0 %v152_v0  ;;  %v988_v22 = vpop.f32.mrf.mxu1  ;;  %v1062_v0 = vmov 0.0  }
  0xd6   :  { %964 = vmatmul.mubr.msk.f32.vlgmr.msra.gmra.mxu0 %vm273_vm2, %v266_v1  ;;  %1017 = vmatprep.subr.mxu0 %v1062_v0 }
  0xd7   :  { %966 = vmatprep.mubr.msk.f32.mxu0 %vm273_vm2, %v267_v2  ;;  %v528_v28 = vpop.f32.mrf.mxu1 }
  0xda   :  { %967 = vmatmul.mubr.msk.f32.gmra.mxu0 %vm273_vm2, %v268_v29  ;;  %v655_v29 = vpop.permute.xlu1 %654 }
  0xdb   :  { %969 = vmatprep.mubr.msk.f32.mxu0 %vm273_vm2, %v269_v3 }
  0xde   :  { %970 = vmatmul.mubr.msk.f32.gmra.mxu0 %vm273_vm2, %v270_v4  ;;  %v650_v4 = vpop.permute.xlu0 %649  ;;  %v645_v7 = vpop.permute.xlu1 %644 }
  0xdf   :  { %972 = vmatprep.mubr.msk.f32.mxu0 %vm273_vm2, %v271_v5 }
  0xe2   :  { %973 = vmatmul.mubr.msk.f32.gmra.mxu0 %vm273_vm2, %v272_v6  ;;  %vm1063_vm2 = vmmov 0  }
  0xe3   :  { %1033 = vmatprep.mubr.msk.f32.mxu0 %vm1063_vm2, %v1062_v0 }
 0x196   :  { %v965_v12 = vpop.f32.mrf.mxu0 }
 0x197   :  { %v504_v44 = vadd.f32 %v979_v8, %v965_v12 }
 0x198   :  { %v364_v13 = vpop.f32.mrf.mxu0 }
 0x199   :  { %v499_v47 = vadd.f32 %v498_v9, %v364_v13  ;;  %v586_v51 = vadd.f32 %v553_v50, %v504_v44  ;;  %v640_v9 = vpop.permute.xlu0 %639 }
 0x19a   :  { %v968_v15 = vpop.f32.mrf.mxu0 }
 0x19b   :  { %v514_v35 = vadd.f32 %v982_v10, %v968_v15  ;;  %v585_v54 = vadd.f32 %v548_v53, %v499_v47  ;;  %v594_v56 = vmax.f32 %v586_v51, 0.0 }
 0x19c   :  { %v374_v17 = vpop.f32.mrf.mxu0 }
 0x19d   :  { %v509_v40 = vadd.f32 %v508_v11, %v374_v17  ;;  %v588_v45 = vadd.f32 %v563_v39, %v514_v35  ;;  %v593_v57 = vmax.f32 %v585_v54, 0.0 }
 0x19e   :  { %v971_v20 = vpop.f32.mrf.mxu0 }
 0x19f   :  { %v524_v26 = vadd.f32 %v985_v14, %v971_v20  ;;  %v587_v48 = vadd.f32 %v558_v43, %v509_v40  ;;  %v596_v52 = vmax.f32 %v588_v45, 0.0 }
 0x1a0   :  { %v384_v21 = vpop.f32.mrf.mxu0 }
 0x1a1   :  { %v519_v31 = vadd.f32 %v518_v18, %v384_v21  ;;  %v590_v36 = vadd.f32 %v573_v23, %v524_v26  ;;  %v595_v55 = vmax.f32 %v587_v48, 0.0 }
 0x1a2   :  { %v974_v24 = vpop.f32.mrf.mxu0 }
 0x1a3   :  { %v534_v27 = vadd.f32 %v988_v22, %v974_v24  ;;  %v589_v41 = vadd.f32 %v568_v25, %v519_v31  ;;  %v598_v46 = vmax.f32 %v590_v36, 0.0 }
 0x1a4   :  { %v394_v30 = vpop.f32.mrf.mxu0 }
 0x1a5   :  { %v592_v33 = vadd.f32 %v583_v19, %v534_v27  ;;  %v529_v34 = vadd.f32 %v528_v28, %v394_v30  ;;  %v597_v49 = vmax.f32 %v589_v41, 0.0  ;;  %v630_v19 = vpop.permute.xlu0 %629 }
 0x1a7   :  { %v600_v37 = vmax.f32 %v592_v33, 0.0  ;;  %v591_v38 = vadd.f32 %v578_v16, %v529_v34  ;;  %v635_v16 = vpop.permute.xlu1 %634  ;;  %v795_v34 = vld [vmem:[%s1312_s8] sm:$0x3] }
 0x1a9   :  { %v599_v42 = vmax.f32 %v591_v38, 0.0  ;;  %989 = vmatprep.subr.mxu1 %v600_v37  ;;  %v620_v27 = vpop.permute.xlu0 %619 }
 0x1aa   :  { %990 = vmatpush3.msra.mxu1 %v600_v37 }
 0x1ab   :  { %991 = vmatprep.subr.mxu1 %v599_v42  ;;  %v625_v24 = vpop.permute.xlu1 %624 }
 0x1ac   :  { %992 = vmatpush3.msra.mxu1 %v599_v42 }
 0x1ad   :  { %993 = vmatprep.subr.mxu1 %v598_v46 }
 0x1ae   :  { %994 = vmatpush3.msra.mxu1 %v598_v46 }
 0x1af   :  { %995 = vmatprep.subr.mxu1 %v597_v49  ;;  %v800_v35 = vpop.permute.xlu1 %799 }
 0x1b0   :  { %996 = vmatpush3.msra.mxu1 %v597_v49 }
 0x1b1   :  { %997 = vmatprep.subr.mxu1 %v596_v52 }
 0x1b2   :  { %998 = vmatpush3.msra.mxu1 %v596_v52 }
 0x1b3   :  { %999 = vmatprep.subr.mxu1 %v595_v55 }
 0x1b4   :  { %1000 = vmatpush3.msra.mxu1 %v595_v55 }
 0x1b5   :  { %1001 = vmatprep.subr.mxu1 %v594_v56 }
 0x1b6   :  { %1002 = vmatpush3.msra.mxu1 %v594_v56 }
 0x1b7   :  { %1003 = vmatprep.subr.mxu1 %v593_v57 }
 0x1b8   :  { %1004 = vmatpush3.msra.mxu1 %v593_v57 }
 0x1b9   :  { %1006 = vmatmul.mubr.msk.f32.vlgmr.msra.gmra.mxu1 %vm657_vm4, %v602_v58 }
 0x1ba   :  { %1008 = vmatprep.mubr.msk.f32.mxu1 %vm657_vm4, %v603_v32 }
 0x1bd   :  { %1009 = vmatmul.mubr.msk.f32.gmra.mxu1 %vm657_vm4, %v604_v59 }
 0x1be   :  { %1011 = vmatprep.mubr.msk.f32.mxu1 %vm657_vm4, %v605_v60 }
 0x1c1   :  { %1012 = vmatmul.mubr.msk.f32.gmra.mxu1 %vm657_vm4, %v606_v61 }
 0x1c2   :  { %1014 = vmatprep.mubr.msk.f32.mxu1 %vm657_vm4, %v607_v62 }
 0x1c5   :  { %1015 = vmatmul.mubr.msk.f32.gmra.mxu1 %vm657_vm4, %v608_v63 }
 0x279   :  { %v1007_v1 = vpop.f32.mrf.mxu1 }
 0x27a   :  { %v754_v25 = vadd.f32 %v1007_v1, %v625_v24 }
 0x27b   :  { %v748_v2 = vpop.f32.mrf.mxu1 }
 0x27c   :  { %v749_v28 = vadd.f32 %v748_v2, %v620_v27  ;;  %v788_v31 = vmax.f32 %v754_v25, 0.0 }
 0x27d   :  { %v1010_v3 = vpop.f32.mrf.mxu1 }
 0x27e   :  { %v764_v20 = vadd.f32 %v1010_v3, %v635_v16  ;;  %v787_v33 = vmax.f32 %v749_v28, 0.0 }
 0x27f   :  { %v758_v5 = vpop.f32.mrf.mxu1 }
 0x280   :  { %v759_v22 = vadd.f32 %v758_v5, %v630_v19  ;;  %v790_v26 = vmax.f32 %v764_v20, 0.0 }
 0x281   :  { %v1013_v6 = vpop.f32.mrf.mxu1 }
 0x282   :  { %v774_v13 = vadd.f32 %v1013_v6, %v645_v7  ;;  %v789_v30 = vmax.f32 %v759_v22, 0.0 }
 0x283   :  { %v768_v8 = vpop.f32.mrf.mxu1 }
 0x284   :  { %v769_v17 = vadd.f32 %v768_v8, %v640_v9  ;;  %v792_v21 = vmax.f32 %v774_v13, 0.0 }
 0x285   :  { %v1016_v10 = vpop.f32.mrf.mxu1 }
 0x286   :  { %v784_v11 = vadd.f32 %v1016_v10, %v655_v29  ;;  %v791_v23 = vmax.f32 %v769_v17, 0.0 }
 0x287   :  { %v778_v12 = vpop.f32.mrf.mxu1 }
 0x288   :  { %v794_v14 = vmax.f32 %v784_v11, 0.0  ;;  %v779_v15 = vadd.f32 %v778_v12, %v650_v4 }
 0x28a   :  { %v793_v18 = vmax.f32 %v779_v15, 0.0  ;;  %1018 = vmatpush3.msra.mxu0 %v794_v14 }
 0x28b   :  { %1019 = vmatprep.subr.mxu0 %v1062_v0 }
 0x28c   :  { %1020 = vmatpush3.msra.mxu0 %v793_v18 }
 0x28d   :  { %1021 = vmatprep.subr.mxu0 %v1062_v0 }
 0x28e   :  { %1022 = vmatpush3.msra.mxu0 %v792_v21 }
 0x28f   :  { %1023 = vmatprep.subr.mxu0 %v1062_v0 }
 0x290   :  { %1024 = vmatpush3.msra.mxu0 %v791_v23 }
 0x291   :  { %1025 = vmatprep.subr.mxu0 %v1062_v0 }
 0x292   :  { %1026 = vmatpush3.msra.mxu0 %v790_v26 }
 0x293   :  { %1027 = vmatprep.subr.mxu0 %v1062_v0 }
 0x294   :  { %1028 = vmatpush3.msra.mxu0 %v789_v30 }
 0x295   :  { %1029 = vmatprep.subr.mxu0 %v1062_v0 }
 0x296   :  { %1030 = vmatpush3.msra.mxu0 %v788_v31 }
 0x297   :  { %1031 = vmatprep.subr.mxu0 %v1062_v0 }
 0x298   :  { %1032 = vmatpush3.msra.mxu0 %v787_v33 }
 0x299   :  { %1034 = vmatmul.mubr.msk.f32.vlgmr.msra.gmra.mxu0 %vm657_vm4, %v795_v34 }
 0x359   :  { %v871_v36 = vpop.f32.mrf.mxu0 }
 0x35a   :  { %v872_v37 = vadd.f32 %v871_v36, %v800_v35 }
 0x35b   :  { %v1035_v38 = vpop.f32.mrf.mxu0 }
 0x35c   :  { %875 = vst [vmem:[%s1313_s10] sm:$0x3] %v872_v37 }

</bundles_post_ra>
